<compile_context>
chip_gen: v7x
topology: tpu7x:2x2x1
jax: 0.10.0
libtpu: 0.0.40
codegen_flags: <defaults>
</compile_context>

<pallas_src>
import functools

import jax
import jax.numpy as jnp
from jax.experimental import pallas as pl
from jax.experimental.pallas import tpu as pltpu


def _round_up(x, m):
    return ((x + m - 1) // m) * m


def _label_smoothing_kernel(pred_ref, tgt_ref, out_ref, *,
                            confidence, smoothing, classes):
    """One batch tile: stable log-softmax + folded smoothed NLL -> per-row loss."""
    x = pred_ref[...]                                   # (tile_b, C), native dtype
    t = tgt_ref[...]                                    # (tile_b, 1), int32
    C = x.shape[-1]

    # Row max in the input dtype (bf16-capable VPU on v6e/v7x; exact for f32).
    m = jnp.max(x, axis=-1, keepdims=True).astype(jnp.float32)       # (tile_b, 1)

    xf = x.astype(jnp.float32)                          # (tile_b, C)

    # Stable logsumexp (EUP exp + one cross-lane reduce).
    lse = jnp.log(jnp.sum(jnp.exp(xf - m), axis=-1, keepdims=True))  # (tile_b, 1)

    # Single weighted reduce replaces the x[target] pick + full-row sum:
    #   w = smoothing/classes + confidence * onehot(target)
    col = jax.lax.broadcasted_iota(jnp.int32, (1, C), 1)             # (1, C)
    w = (smoothing / classes) + confidence * (col == t).astype(jnp.float32)
    wsum = jnp.sum(w * xf, axis=-1, keepdims=True)                   # (tile_b, 1)

    # sum_c(w) is a compile-time constant (== 1 when classes == C).
    w_total = confidence + C * (smoothing / classes)

    # loss_row = sum_c(-w * logp) = sum_c(w) * (m + lse) - sum_c(w * x)
    out_ref[...] = w_total * (m + lse) - wsum


def label_smoothing_loss(pred, target, *, classes, smoothing=0.1, tile_b=None):
    """pred: (B, C) float; target: (B,) int labels. Returns scalar f32 loss."""
    B, C = pred.shape
    confidence = 1.0 - smoothing

    itemsize = jnp.dtype(pred.dtype).itemsize
    sublane = {4: 8, 2: 16, 1: 32}.get(itemsize, 8)

    # Tile sizing from a VMEM byte budget.  The class (lane) axis is padded to
    # 128 in VMEM, so budget against the padded footprint; use f32 width since
    # the in-kernel temporaries dominate for sub-32-bit inputs.
    c_pad = _round_up(C, 128)
    if tile_b is None:
        budget_bytes = 8 * 1024 * 1024                 # per pred block (f32-equiv)
        tile_b = budget_bytes // (c_pad * 4)
        tile_b = min(tile_b, 8192)
    tile_b = max(sublane, (tile_b // sublane) * sublane)   # sublane aligned
    tile_b = min(tile_b, _round_up(B, sublane))            # don't exceed batch

    num_tiles = pl.cdiv(B, tile_b)
    B_pad = num_tiles * tile_b

    tgt2d = target.reshape(B, 1).astype(jnp.int32)
    if B_pad != B:
        tgt2d = jnp.pad(tgt2d, ((0, B_pad - B), (0, 0)))

    kernel = functools.partial(
        _label_smoothing_kernel,
        confidence=confidence,
        smoothing=smoothing,
        classes=classes,
    )

    cost = pl.CostEstimate(
        flops=5 * B * C,                # max/sub/exp-add/mul/weighted-add passes
        transcendentals=B * C + B,      # exp over the tile + per-row log
        bytes_accessed=B * C * itemsize + B_pad * 4 + B_pad * 4,
    )

    per_row = pl.pallas_call(
        kernel,
        out_shape=jax.ShapeDtypeStruct((B_pad, 1), jnp.float32),
        grid_spec=pltpu.PrefetchScalarGridSpec(
            num_scalar_prefetch=0,
            grid=(num_tiles,),
            in_specs=[
                pl.BlockSpec((tile_b, C), lambda i: (i, 0)),
                pl.BlockSpec((tile_b, 1), lambda i: (i, 0)),
            ],
            out_specs=pl.BlockSpec((tile_b, 1), lambda i: (i, 0)),
        ),
        compiler_params=pltpu.CompilerParams(
            # Independent per-tile outputs -> parallel grid (megacore on v7x).
            dimension_semantics=("parallel",),
            vmem_limit_bytes=48 * 1024 * 1024,
        ),
        cost_estimate=cost,
    )(pred, tgt2d)

    # Invariant: padded rows [B, B_pad) may hold garbage (pred block reads past
    # B); they MUST be sliced off before the reduction.
    return jnp.sum(per_row[:B, 0]) / B


def label_smoothing_loss_ref(pred, target, *, classes, smoothing=0.1):
    """Pure-JAX reference mirroring the PyTorch module (int-label path)."""
    confidence = 1.0 - smoothing
    logp = jax.nn.log_softmax(pred.astype(jnp.float32), axis=-1)
    onehot = jax.nn.one_hot(target, pred.shape[-1], dtype=jnp.float32)
    smooth_tgt = onehot * confidence + smoothing / classes
    return jnp.mean(jnp.sum(-smooth_tgt * logp, axis=-1))


if __name__ == "__main__":
    # Synthetic small problem: batch=16, classes=32.
    B, C = 16, 32
    smoothing = 0.1

    key = jax.random.PRNGKey(0)
    kp, kt = jax.random.split(key)
    pred = jax.random.normal(kp, (B, C), dtype=jnp.float32)
    target = jax.random.randint(kt, (B,), 0, C, dtype=jnp.int32)

    loss = label_smoothing_loss(pred, target, classes=C, smoothing=smoothing)
    loss = jax.block_until_ready(loss)

    ref = label_smoothing_loss_ref(pred, target, classes=C, smoothing=smoothing)
    assert jnp.allclose(loss, ref, rtol=1e-5, atol=1e-4), (loss, ref)

    print("KERNEL_OK")
</pallas_src>

<mosaic_0001>
module attributes {stable_mosaic.version = 11 : i64} {
  func.func @_label_smoothing_kernel(%arg0: i32, %arg1: memref<16x32xf32, #tpu.memory_space<vmem>>, %arg2: memref<16x1xi32, #tpu.memory_space<vmem>>, %arg3: memref<16x1xf32, #tpu.memory_space<vmem>>) attributes {dimension_semantics = [#tpu.dimension_semantics<parallel>], iteration_bounds = array<i64: 1>, scalar_prefetch = 0 : i64, scratch_operands = 0 : i64, tpu.core_type = #tpu.core_type<tc>, window_params = [{transform_indices = @transform_0, window_bounds = array<i64: 16, 32>}, {transform_indices = @transform_1, window_bounds = array<i64: 16, 1>}, {transform_indices = @transform_2, window_bounds = array<i64: 16, 1>}]} {
    %c0 = arith.constant 0 : index
    %c0_0 = arith.constant 0 : index
    %0 = vector.load %arg1[%c0, %c0_0] : memref<16x32xf32, #tpu.memory_space<vmem>>, vector<16x32xf32>
    %c0_1 = arith.constant 0 : index
    %c0_2 = arith.constant 0 : index
    %1 = vector.load %arg2[%c0_1, %c0_2] : memref<16x1xi32, #tpu.memory_space<vmem>>, vector<16x1xi32>
    %cst = arith.constant dense<0xFF800000> : vector<16xf32>
    %2 = vector.multi_reduction <maximumf>, %0, %cst [1] : vector<16x32xf32> to vector<16xf32>
    %3 = vector.shape_cast %2 : vector<16xf32> to vector<16x1xf32>
    %4 = vector.broadcast %3 : vector<16x1xf32> to vector<16x32xf32>
    %5 = arith.subf %0, %4 : vector<16x32xf32>
    %6 = math.exp %5 : vector<16x32xf32>
    %cst_3 = arith.constant dense<0.000000e+00> : vector<16xf32>
    %7 = vector.multi_reduction <add>, %6, %cst_3 [1] : vector<16x32xf32> to vector<16xf32>
    %8 = vector.shape_cast %7 : vector<16xf32> to vector<16x1xf32>
    %9 = math.log %8 : vector<16x1xf32>
    %10 = tpu.iota {dimensions = array<i32: 1>} : vector<1x32xi32>
    %11 = vector.broadcast %10 : vector<1x32xi32> to vector<16x32xi32>
    %12 = vector.broadcast %1 : vector<16x1xi32> to vector<16x32xi32>
    %13 = arith.cmpi eq, %11, %12 : vector<16x32xi32>
    %14 = arith.extui %13 : vector<16x32xi1> to vector<16x32xi32>
    %15 = arith.sitofp %14 : vector<16x32xi32> to vector<16x32xf32>
    %cst_4 = arith.constant 0.899999976 : f32
    %16 = vector.broadcast %cst_4 : f32 to vector<16x32xf32>
    %17 = arith.mulf %16, %15 : vector<16x32xf32>
    %cst_5 = arith.constant 3.125000e-03 : f32
    %18 = vector.broadcast %cst_5 : f32 to vector<16x32xf32>
    %19 = arith.addf %18, %17 : vector<16x32xf32>
    %20 = arith.mulf %19, %0 : vector<16x32xf32>
    %cst_6 = arith.constant dense<0.000000e+00> : vector<16xf32>
    %21 = vector.multi_reduction <add>, %20, %cst_6 [1] : vector<16x32xf32> to vector<16xf32>
    %22 = vector.shape_cast %21 : vector<16xf32> to vector<16x1xf32>
    %23 = arith.addf %3, %9 : vector<16x1xf32>
    %cst_7 = arith.constant 1.000000e+00 : f32
    %24 = vector.broadcast %cst_7 : f32 to vector<16x1xf32>
    %25 = arith.mulf %24, %23 : vector<16x1xf32>
    %26 = arith.subf %25, %22 : vector<16x1xf32>
    %c0_8 = arith.constant 0 : index
    %c0_9 = arith.constant 0 : index
    %27 = vector.load %arg3[%c0_8, %c0_9] : memref<16x1xf32, #tpu.memory_space<vmem>>, vector<16x1xf32>
    tpu.vector_store %arg3[%c0_8, %c0_9], %26 {strides = array<i32>} : memref<16x1xf32, #tpu.memory_space<vmem>>, vector<16x1xf32>,
    return
  }
  func.func @transform_0(%arg0: i32) -> (i32, i32) {
    %c0_i32 = arith.constant 0 : i32
    %c0_i32_0 = arith.constant 0 : i32
    return %arg0, %c0_i32 : i32, i32
  }
  func.func @transform_1(%arg0: i32) -> (i32, i32) {
    %c0_i32 = arith.constant 0 : i32
    %c0_i32_0 = arith.constant 0 : i32
    return %arg0, %c0_i32 : i32, i32
  }
  func.func @transform_2(%arg0: i32) -> (i32, i32) {
    %c0_i32 = arith.constant 0 : i32
    %c0_i32_0 = arith.constant 0 : i32
    return %arg0, %c0_i32 : i32, i32
  }
}

</mosaic_0001>

<bundles_post_ra>
// kernel: tpu_custom_call.1
= control target key start
LH: loop header
LB: loop body
LE: loop exit
PB: predicated region body
PF: predicated region fallthrough
CT: control target
= control target key end

     0   :  { %vm15_vm0 = vcmask 261120   ;;  %v89_v2 = vmov 0   ;;  %v38_v7 = vlaneseq  ;;  %v90_v14 = vmov 0.0   ;;  %s130_s0 = inlined_call_operand.vmem [shape: f32[16,32], index: 0, kind: input, shape index: {}]   ;;  %s131_s1 = inlined_call_operand.vmem [shape: s32[16,1], index: 1, kind: input, shape index: {}]   ;;  %s132_s2 = inlined_call_operand.vmem [shape: f32[16,1], index: 2, kind: output, shape index: {}]  }
   0x1   :  { %v11_v0 = vld [vmem:[%s130_s0] sm:$0xff]  ;;  %v12_v1 = vld [vmem:[%s130_s0 + $0x8] sm:$0xff]  ;;  %79 = vset.pattern.permute.xlu1 %v89_v2  ;;  %80 = vset.pattern.permute.xlu0 %v89_v2  ;;  %vm68_vm3 = vcmask 7168  }
   0x2   :  { %v13_v3 = vld [vmem:[%s131_s1] sm:$0xff]  ;;  %v16_v4 = vsel %vm15_vm0, %v11_v0, -inf  ;;  %v14_v5 = vld [vmem:[%s131_s1 + $0x8] sm:$0xff]  ;;  %v19_v6 = vsel %vm15_vm0, %v12_v1, -inf  ;;  %v39_v9 = vand.u32 127, %v38_v7 }
   0x3   :  { %41 = vperm.xlu1 %79, %v13_v3   ;;  %17 = vmax.xlane.f32.xlu0 %v16_v4 }
   0x7   :  { %44 = vperm.xlu1 %79, %v14_v5   ;;  %20 = vmax.xlane.f32.xlu0 %v19_v6 }
  0x82   :  { %v42_v8 = vpop.permute.xlu1 %41 }
  0x83   :  { %vm46_vm1 = vcmp.eq.s32.totalorder %v39_v9, %v42_v8 }
  0x84   :  { %v75_v15 = vsel %vm46_vm1, 1.0, %v90_v14 }
  0x85   :  { %v52_v18 = vmul.f32 0.9, %v75_v15 }
  0x86   :  { %v45_v12 = vpop.permute.xlu1 %44 }
  0x87   :  { %vm47_vm2 = vcmp.eq.s32.totalorder %v39_v9, %v45_v12  ;;  %v54_v21 = vadd.f32 0.003125, %v52_v18 }
  0x88   :  { %v76_v20 = vsel %vm47_vm2, 1.0, %v90_v14 }
  0x89   :  { %v53_v22 = vmul.f32 0.9, %v76_v20  ;;  %v56_v24 = vmul.f32 %v54_v21, %v11_v0 }
  0x8b   :  { %v55_v23 = vadd.f32 0.003125, %v53_v22  ;;  %v58_v27 = vsel %vm15_vm0, %v56_v24, 0.0 }
  0x8d   :  { %v57_v28 = vmul.f32 %v55_v23, %v12_v1 }
  0x8f   :  { %v61_v31 = vsel %vm15_vm0, %v57_v28, 0.0 }
  0x90   :  { %v18_v10 = vpop.xlane.xlu0 %17 }
  0x91   :  { %v22_v11 = vsub.f32 %v11_v0, %v18_v10 }
  0x93   :  { %v24_v13 = vmul.f32 1.442695, %v22_v11 }
  0x94   :  { %v21_v16 = vpop.xlane.xlu0 %20 }
  0x95   :  { %81 = vpow2.f32 %v24_v13  ;;  %v23_v17 = vsub.f32 %v12_v1, %v21_v16 }
  0x97   :  { %v26_v19 = vmul.f32 1.442695, %v23_v17 }
  0x99   :  { %83 = vpow2.f32 %v26_v19 }
  0x9f   :  { %v82_v25 = vpop.eup %81 }
  0xa0   :  { %v28_v26 = vsel %vm15_vm0, %v82_v25, 0.0 }
  0xa1   :  { %29 = vadd.xlane.f32.xlu0 %v28_v26 }
  0xa3   :  { %v84_v29 = vpop.eup %83 }
  0xa4   :  { %v31_v30 = vsel %vm15_vm0, %v84_v29, 0.0 }
  0xa5   :  { %32 = vadd.xlane.f32.xlu1 %v31_v30  ;;  %59 = vadd.xlane.f32.xlu0 %v58_v27 }
  0xa9   :  { %62 = vadd.xlane.f32.xlu0 %v61_v31 }
 0x12e   :  { %v30_v32 = vpop.xlane.xlu0 %29 }
 0x12f   :  { %85 = vlog2.f32 %v30_v32 }
 0x132   :  { %v33_v33 = vpop.xlane.xlu1 %32  ;;  %v60_v36 = vpop.xlane.xlu0 %59 }
 0x133   :  { %87 = vlog2.f32 %v33_v33 }
 0x136   :  { %v63_v42 = vpop.xlane.xlu0 %62 }
 0x139   :  { %v86_v34 = vpop.eup %85 }
 0x13a   :  { %v35_v35 = vmul.f32 0.6931472, %v86_v34 }
 0x13c   :  { %v64_v37 = vadd.f32 %v35_v35, %v18_v10 }
 0x13d   :  { %v88_v38 = vpop.eup %87 }
 0x13e   :  { %v37_v39 = vmul.f32 0.6931472, %v88_v38  ;;  %v66_v40 = vsub.f32 %v64_v37, %v60_v36 }
 0x140   :  { %69 = vst.msk [vmem:[%s132_s2] sm:$0xff] %vm68_vm3, %v66_v40  ;;  %v65_v41 = vadd.f32 %v37_v39, %v21_v16 }
 0x142   :  { %v67_v43 = vsub.f32 %v65_v41, %v63_v42 }
 0x144   :  { %70 = vst.msk [vmem:[%s132_s2 + $0x8] sm:$0xff] %vm68_vm3, %v67_v43 }

</bundles_post_ra>
